<compile_context>
chip_gen: v7x
topology: tpu7x:2x2x1
jax: 0.10.0
libtpu: 0.0.40
codegen_flags: <defaults>
</compile_context>

<pallas_src>
import jax
import jax.numpy as jnp
from jax.experimental import pallas as pl
from jax.experimental.pallas import tpu as pltpu

# ---------------------------------------------------------------------------
# Problem sizes (synthetic config for the module)
# ---------------------------------------------------------------------------
BATCH = 8          # batch size
IN_DIM = 32        # input feature dim (mlp backbone input)
HID_DIM = 64       # hidden dim of the MLP encoder
OUT_DIM = 64       # args.consis_enc.output_dim
PROJ_DIM = 32      # args.consis_enc.project_dim
LANES = 128        # TPU lane width (output slab / slab lane padding)

BN_EPS = 1e-5
NORM_EPS = 1e-12   # F.normalize eps

# ---------------------------------------------------------------------------
# Packed parameter slab layout (rows; all row offsets are multiples of 8)
# ---------------------------------------------------------------------------
ROW_W1 = 0                       # [IN_DIM , HID_DIM ]
ROW_B1 = ROW_W1 + IN_DIM         # [BATCH  , HID_DIM ]  (pre-broadcast bias)
ROW_W2 = ROW_B1 + BATCH          # [HID_DIM, OUT_DIM ]
ROW_B2 = ROW_W2 + HID_DIM        # [BATCH  , OUT_DIM ]
ROW_WP1 = ROW_B2 + BATCH         # [OUT_DIM, OUT_DIM ]
ROW_GAMMA = ROW_WP1 + OUT_DIM    # [BATCH  , OUT_DIM ]
ROW_BETA = ROW_GAMMA + BATCH     # [BATCH  , OUT_DIM ]
ROW_WP2 = ROW_BETA + BATCH       # [OUT_DIM, PROJ_DIM] (lanes PROJ_DIM..OUT_DIM are zero)
ROW_BP2 = ROW_WP2 + OUT_DIM      # [BATCH  , PROJ_DIM] (lanes PROJ_DIM..OUT_DIM are zero)
SLAB_ROWS = ROW_BP2 + BATCH      # 264 rows total (multiple of 8)


# ---------------------------------------------------------------------------
# Pallas kernel: entire forward (encoder + projection head + L2 normalize)
# ---------------------------------------------------------------------------
def _contrastive_fwd_kernel(x_ref, p_ref, o_ref):
    # x_ref : [BATCH, IN_DIM]          f32
    # p_ref : [SLAB_ROWS, LANES]       f32 packed parameter slab
    # o_ref : [BATCH, LANES]           f32 (feat | normalized proj | zero pad)
    x = x_ref[...]

    # Static slab views (row offsets all multiples of 8, lane offset 0).
    w1 = p_ref[ROW_W1:ROW_W1 + IN_DIM, 0:HID_DIM]
    b1 = p_ref[ROW_B1:ROW_B1 + BATCH, 0:HID_DIM]
    w2 = p_ref[ROW_W2:ROW_W2 + HID_DIM, 0:OUT_DIM]
    b2 = p_ref[ROW_B2:ROW_B2 + BATCH, 0:OUT_DIM]
    wp1 = p_ref[ROW_WP1:ROW_WP1 + OUT_DIM, 0:OUT_DIM]
    gamma = p_ref[ROW_GAMMA:ROW_GAMMA + BATCH, 0:OUT_DIM]
    beta = p_ref[ROW_BETA:ROW_BETA + BATCH, 0:OUT_DIM]
    # wp2 / bp2 are read at OUT_DIM lanes wide: lanes PROJ_DIM..OUT_DIM are zero,
    # so the projection output comes out already zero-padded to 64 lanes.
    wp2 = p_ref[ROW_WP2:ROW_WP2 + OUT_DIM, 0:OUT_DIM]
    bp2 = p_ref[ROW_BP2:ROW_BP2 + BATCH, 0:OUT_DIM]

    # ---- encoder: Linear -> ReLU -> Linear -----------------------------------
    h = jnp.dot(x, w1, preferred_element_type=jnp.float32) + b1
    h = jnp.maximum(h, 0.0)
    feat = jnp.dot(h, w2, preferred_element_type=jnp.float32) + b2

    # ---- projection head ------------------------------------------------------
    # Linear(OUT_DIM, OUT_DIM, bias=False)
    p = jnp.dot(feat, wp1, preferred_element_type=jnp.float32)

    # BatchNorm1d (training mode: batch statistics, biased variance)
    mean = jnp.mean(p, axis=0, keepdims=True)
    pc = p - mean
    var = jnp.mean(pc * pc, axis=0, keepdims=True)
    p_hat = pc * jax.lax.rsqrt(var + BN_EPS) * gamma + beta

    # ReLU
    p_hat = jnp.maximum(p_hat, 0.0)

    # Linear(OUT_DIM, PROJ_DIM, bias=True)  (zero-padded to OUT_DIM lanes)
    out = jnp.dot(p_hat, wp2, preferred_element_type=jnp.float32) + bp2

    # F.normalize(out, dim=-1): out / max(||out||_2, eps)
    # (zero padding lanes do not contribute to the norm)
    sumsq = jnp.sum(out * out, axis=-1, keepdims=True)
    inv_norm = pl.reciprocal(jnp.maximum(jnp.sqrt(sumsq), NORM_EPS), approx=True)
    out_n = out * inv_norm

    # Single lane-dense [BATCH, 128] store: [feat(64) | normalized proj(32) | 0(32)]
    o_ref[...] = jnp.concatenate([feat, out_n], axis=-1).astype(o_ref.dtype)


# ---------------------------------------------------------------------------
# Host-side parameter packing into one lane-padded slab
# ---------------------------------------------------------------------------
def pack_params(params):
    (w1, b1, w2, b2, wp1, gamma, beta, wp2, bp2) = params
    slab = jnp.zeros((SLAB_ROWS, LANES), jnp.float32)

    def put(s, row, arr):
        return s.at[row:row + arr.shape[0], 0:arr.shape[1]].set(arr)

    def bcast(v):  # (1, N) -> (BATCH, N)
        return jnp.broadcast_to(v.reshape(1, -1), (BATCH, v.shape[-1]))

    slab = put(slab, ROW_W1, w1)
    slab = put(slab, ROW_B1, bcast(b1))
    slab = put(slab, ROW_W2, w2)
    slab = put(slab, ROW_B2, bcast(b2))
    slab = put(slab, ROW_WP1, wp1)
    slab = put(slab, ROW_GAMMA, bcast(gamma))
    slab = put(slab, ROW_BETA, bcast(beta))
    slab = put(slab, ROW_WP2, wp2)
    slab = put(slab, ROW_BP2, bcast(bp2))
    return slab


# ---------------------------------------------------------------------------
# Wrapper
# ---------------------------------------------------------------------------
_FLOPS = 2 * BATCH * (IN_DIM * HID_DIM + HID_DIM * OUT_DIM
                      + OUT_DIM * OUT_DIM + OUT_DIM * PROJ_DIM)
_TRANSC = OUT_DIM + 2 * BATCH                 # rsqrt per BN column, sqrt+recip per row
_BYTES = 4 * (BATCH * IN_DIM + SLAB_ROWS * LANES + BATCH * LANES)


@jax.jit
def contrastive_forward(x, param_slab):
    """Run the ContrastiveModel forward pass in one Pallas kernel.

    Single grid point (everything fits easily in VMEM); 2 input DMAs, 1 output DMA.
    """
    vmem_spec = pl.BlockSpec(memory_space=pltpu.MemorySpace.VMEM)

    out_slab = pl.pallas_call(
        _contrastive_fwd_kernel,
        out_shape=jax.ShapeDtypeStruct((x.shape[0], LANES), jnp.float32),
        in_specs=[vmem_spec, vmem_spec],
        out_specs=vmem_spec,
        cost_estimate=pl.CostEstimate(
            flops=_FLOPS, transcendentals=_TRANSC, bytes_accessed=_BYTES),
    )(x, param_slab)

    feat = out_slab[:, :OUT_DIM]
    out = out_slab[:, OUT_DIM:OUT_DIM + PROJ_DIM]
    return feat, out


# ---------------------------------------------------------------------------
# Deterministic parameter construction (PyTorch-style uniform(+-1/sqrt(fan_in)))
# ---------------------------------------------------------------------------
def make_params(key):
    ks = jax.random.split(key, 8)

    def lin(k, fan_in, fan_out, bias):
        bound = 1.0 / jnp.sqrt(fan_in)
        kw, kb = jax.random.split(k)
        w = jax.random.uniform(kw, (fan_in, fan_out), jnp.float32, -bound, bound)
        b = (jax.random.uniform(kb, (1, fan_out), jnp.float32, -bound, bound)
             if bias else None)
        return w, b

    w1, b1 = lin(ks[0], IN_DIM, HID_DIM, True)
    w2, b2 = lin(ks[1], HID_DIM, OUT_DIM, True)
    wp1, _ = lin(ks[2], OUT_DIM, OUT_DIM, False)
    gamma = jnp.ones((1, OUT_DIM), jnp.float32)   # BatchNorm1d init
    beta = jnp.zeros((1, OUT_DIM), jnp.float32)
    wp2, bp2 = lin(ks[3], OUT_DIM, PROJ_DIM, True)
    return (w1, b1, w2, b2, wp1, gamma, beta, wp2, bp2)


# ---------------------------------------------------------------------------
# Pure-JAX reference (for a sanity check)
# ---------------------------------------------------------------------------
def reference_forward(x, params):
    (w1, b1, w2, b2, wp1, gamma, beta, wp2, bp2) = params
    h = jnp.maximum(x @ w1 + b1, 0.0)
    feat = h @ w2 + b2
    p = feat @ wp1
    mean = jnp.mean(p, axis=0, keepdims=True)
    var = jnp.mean((p - mean) ** 2, axis=0, keepdims=True)
    p_hat = (p - mean) / jnp.sqrt(var + BN_EPS) * gamma + beta
    p_hat = jnp.maximum(p_hat, 0.0)
    out = p_hat @ wp2 + bp2
    norm = jnp.sqrt(jnp.sum(out * out, axis=-1, keepdims=True))
    return feat, out / jnp.maximum(norm, NORM_EPS)


if __name__ == "__main__":
    key = jax.random.PRNGKey(0)
    kx, kp = jax.random.split(key)

    x = jax.random.normal(kx, (BATCH, IN_DIM), jnp.float32)
    params = make_params(kp)
    slab = pack_params(params)

    feat, out = contrastive_forward(x, slab)
    jax.block_until_ready((feat, out))

    feat_ref, out_ref = reference_forward(x, params)
    assert jnp.allclose(feat, feat_ref, atol=1e-4, rtol=1e-4), "feature mismatch"
    # Slightly looser bound on the normalized head: approx EUP reciprocal.
    assert jnp.allclose(out, out_ref, atol=2e-3, rtol=2e-3), "projection mismatch"

    print("KERNEL_OK")
</pallas_src>

<mosaic_0001>
module attributes {stable_mosaic.version = 11 : i64} {
  func.func @_contrastive_fwd_kernel(%arg0: memref<8x32xf32, #tpu.memory_space<vmem>>, %arg1: memref<264x128xf32, #tpu.memory_space<vmem>>, %arg2: memref<8x128xf32, #tpu.memory_space<vmem>>) attributes {dimension_semantics = [], scalar_prefetch = 0 : i64, scratch_operands = 0 : i64, tpu.core_type = #tpu.core_type<tc>} {
    %c0 = arith.constant 0 : index
    %c0_0 = arith.constant 0 : index
    %0 = vector.load %arg0[%c0, %c0_0] : memref<8x32xf32, #tpu.memory_space<vmem>>, vector<8x32xf32>
    %c0_1 = arith.constant 0 : index
    %c0_2 = arith.constant 0 : index
    %1 = vector.load %arg1[%c0_1, %c0_2] : memref<264x128xf32, #tpu.memory_space<vmem>>, vector<32x64xf32>
    %c32 = arith.constant 32 : index
    %c0_3 = arith.constant 0 : index
    %2 = vector.load %arg1[%c32, %c0_3] : memref<264x128xf32, #tpu.memory_space<vmem>>, vector<8x64xf32>
    %c40 = arith.constant 40 : index
    %c0_4 = arith.constant 0 : index
    %3 = vector.load %arg1[%c40, %c0_4] : memref<264x128xf32, #tpu.memory_space<vmem>>, vector<64x64xf32>
    %c104 = arith.constant 104 : index
    %c0_5 = arith.constant 0 : index
    %4 = vector.load %arg1[%c104, %c0_5] : memref<264x128xf32, #tpu.memory_space<vmem>>, vector<8x64xf32>
    %c112 = arith.constant 112 : index
    %c0_6 = arith.constant 0 : index
    %5 = vector.load %arg1[%c112, %c0_6] : memref<264x128xf32, #tpu.memory_space<vmem>>, vector<64x64xf32>
    %c176 = arith.constant 176 : index
    %c0_7 = arith.constant 0 : index
    %6 = vector.load %arg1[%c176, %c0_7] : memref<264x128xf32, #tpu.memory_space<vmem>>, vector<8x64xf32>
    %c184 = arith.constant 184 : index
    %c0_8 = arith.constant 0 : index
    %7 = vector.load %arg1[%c184, %c0_8] : memref<264x128xf32, #tpu.memory_space<vmem>>, vector<8x64xf32>
    %c192 = arith.constant 192 : index
    %c0_9 = arith.constant 0 : index
    %8 = vector.load %arg1[%c192, %c0_9] : memref<264x128xf32, #tpu.memory_space<vmem>>, vector<64x64xf32>
    %c256 = arith.constant 256 : index
    %c0_10 = arith.constant 0 : index
    %9 = vector.load %arg1[%c256, %c0_10] : memref<264x128xf32, #tpu.memory_space<vmem>>, vector<8x64xf32>
    %cst = arith.constant dense<0.000000e+00> : vector<8x64xf32>
    %10 = tpu.matmul %0, %1, %cst {dimension_numbers = #tpu.dot_dimension_numbers<[1], [0], [0], [1], [0, 0, 1, 1], [], []>} : vector<8x32xf32>, vector<32x64xf32>, vector<8x64xf32> -> vector<8x64xf32>
    %11 = arith.addf %10, %2 : vector<8x64xf32>
    %cst_11 = arith.constant 0.000000e+00 : f32
    %12 = vector.broadcast %cst_11 : f32 to vector<8x64xf32>
    %13 = arith.maximumf %11, %12 : vector<8x64xf32>
    %cst_12 = arith.constant dense<0.000000e+00> : vector<8x64xf32>
    %14 = tpu.matmul %13, %3, %cst_12 {dimension_numbers = #tpu.dot_dimension_numbers<[1], [0], [0], [1], [0, 0, 1, 1], [], []>} : vector<8x64xf32>, vector<64x64xf32>, vector<8x64xf32> -> vector<8x64xf32>
    %15 = arith.addf %14, %4 : vector<8x64xf32>
    %cst_13 = arith.constant dense<0.000000e+00> : vector<8x64xf32>
    %16 = tpu.matmul %15, %5, %cst_13 {dimension_numbers = #tpu.dot_dimension_numbers<[1], [0], [0], [1], [0, 0, 1, 1], [], []>} : vector<8x64xf32>, vector<64x64xf32>, vector<8x64xf32> -> vector<8x64xf32>
    %cst_14 = arith.constant dense<0.000000e+00> : vector<64xf32>
    %17 = vector.multi_reduction <add>, %16, %cst_14 [0] : vector<8x64xf32> to vector<64xf32>
    %18 = vector.shape_cast %17 : vector<64xf32> to vector<1x64xf32>
    %cst_15 = arith.constant 8.000000e+00 : f32
    %19 = vector.broadcast %cst_15 : f32 to vector<1x64xf32>
    %20 = arith.divf %18, %19 : vector<1x64xf32>
    %21 = vector.broadcast %20 : vector<1x64xf32> to vector<8x64xf32>
    %22 = arith.subf %16, %21 : vector<8x64xf32>
    %23 = arith.mulf %22, %22 : vector<8x64xf32>
    %cst_16 = arith.constant dense<0.000000e+00> : vector<64xf32>
    %24 = vector.multi_reduction <add>, %23, %cst_16 [0] : vector<8x64xf32> to vector<64xf32>
    %25 = vector.shape_cast %24 : vector<64xf32> to vector<1x64xf32>
    %cst_17 = arith.constant 8.000000e+00 : f32
    %26 = vector.broadcast %cst_17 : f32 to vector<1x64xf32>
    %27 = arith.divf %25, %26 : vector<1x64xf32>
    %cst_18 = arith.constant 9.99999974E-6 : f32
    %28 = vector.broadcast %cst_18 : f32 to vector<1x64xf32>
    %29 = arith.addf %27, %28 : vector<1x64xf32>
    %30 = math.rsqrt %29 : vector<1x64xf32>
    %31 = vector.broadcast %30 : vector<1x64xf32> to vector<8x64xf32>
    %32 = arith.mulf %22, %31 : vector<8x64xf32>
    %33 = arith.mulf %32, %6 : vector<8x64xf32>
    %34 = arith.addf %33, %7 : vector<8x64xf32>
    %cst_19 = arith.constant 0.000000e+00 : f32
    %35 = vector.broadcast %cst_19 : f32 to vector<8x64xf32>
    %36 = arith.maximumf %34, %35 : vector<8x64xf32>
    %cst_20 = arith.constant dense<0.000000e+00> : vector<8x64xf32>
    %37 = tpu.matmul %36, %8, %cst_20 {dimension_numbers = #tpu.dot_dimension_numbers<[1], [0], [0], [1], [0, 0, 1, 1], [], []>} : vector<8x64xf32>, vector<64x64xf32>, vector<8x64xf32> -> vector<8x64xf32>
    %38 = arith.addf %37, %9 : vector<8x64xf32>
    %39 = arith.mulf %38, %38 : vector<8x64xf32>
    %cst_21 = arith.constant dense<0.000000e+00> : vector<8xf32>
    %40 = vector.multi_reduction <add>, %39, %cst_21 [1] : vector<8x64xf32> to vector<8xf32>
    %41 = vector.shape_cast %40 : vector<8xf32> to vector<8x1xf32>
    %42 = math.sqrt %41 : vector<8x1xf32>
    %cst_22 = arith.constant 9.99999996E-13 : f32
    %43 = vector.broadcast %cst_22 : f32 to vector<8x1xf32>
    %44 = arith.maximumf %42, %43 : vector<8x1xf32>
    %45 = tpu.reciprocal %44 {approx = true} : vector<8x1xf32> -> vector<8x1xf32>
    %46 = vector.broadcast %45 : vector<8x1xf32> to vector<8x64xf32>
    %47 = arith.mulf %38, %46 : vector<8x64xf32>
    %48 = tpu.concatenate %15, %47 in 1 : vector<8x64xf32>, vector<8x64xf32> -> vector<8x128xf32>
    %c0_23 = arith.constant 0 : index
    %c0_24 = arith.constant 0 : index
    %49 = vector.load %arg2[%c0_23, %c0_24] : memref<8x128xf32, #tpu.memory_space<vmem>>, vector<8x128xf32>
    tpu.vector_store %arg2[%c0_23, %c0_24], %48 {strides = array<i32>} : memref<8x128xf32, #tpu.memory_space<vmem>>, vector<8x128xf32>,
    return
  }
}

</mosaic_0001>

<bundles_post_ra>
// kernel: contrastive_forward.1
= control target key start
LH: loop header
LB: loop body
LE: loop exit
PB: predicated region body
PF: predicated region fallthrough
CT: control target
= control target key end

     0   :  { %7 = vsyncpa [#allocation3], 0  ;;  %s711_s0 = inlined_call_operand.hbm [shape: f32[8,32], index: 0, kind: input, shape index: {}]   ;;  %s712_s1 = inlined_call_operand.hbm [shape: f32[264,128], index: 1, kind: input, shape index: {}]   ;;  %s713_s2 = inlined_call_operand.vmem [shape: f32[8,128], index: 2, kind: output, shape index: {}]  }
   0x1   :  { %8 = vsyncpa [#allocation5], 0  ;;  %s625_s9 = smov [#allocation2]   ;;  %s626_s11 = smov [#allocation4]  }
   0x2   :  { %s15_s10 = sshll.u32 %s625_s9, 4  ;;  %s24_s12 = sshll.u32 %s626_s11, 4  ;;  %s16_s10 = int_to_ptr.vmem [resolvable:$true] %s15_s10  ;;  %s648_s12 = int_to_ptr.vmem [resolvable:$true] %s24_s12 }
   0x3   :  { %s577_s15 = scalar_lea.hbm %s711_s0, 128 }
   0x4   :  { %p578_p0 = scmp.ne.s32.totalorder %s711_s0, %s577_s15  ;;  %p581_p1 = scmp.lt.u32.totalorder %s577_s15, %s711_s0 }
   0x6   :  { %p583_p2 = pnand %p581_p1, %p578_p0 }
   0x8   :  { %586 = shalt.err (!%p583_p2)
}
   0x9   :  { %s587_s20 = scalar_lea.vmem %s16_s10, 128  ;;  %p592_p4 = scmp.lt.s32.totalorder %s16_s10, %s16_s10 }
   0xa   :  { %p588_p3 = scmp.ne.s32.totalorder %s16_s10, %s587_s20  ;;  %p593_p5 = scmp.lt.s32.totalorder %s587_s20, %s587_s20 }
   0xc   :  { %p594_p6 = por %p593_p5, %p592_p4 }
   0xe   :  { %p595_p7 = pnand %p594_p6, %p588_p3 }
  0x10   :  { %598 = shalt.err (!%p595_p7)
}
  0x11   :  { %18 = dma.hbm_to_vmem [thread:$0]  %s711_s0, 128, %s16_s10, [#allocation3]  }
  0x12   :  { %s599_s25 = scalar_lea.hbm %s712_s1, 4224 }
  0x13   :  { %p600_p8 = scmp.ne.s32.totalorder %s712_s1, %s599_s25  ;;  %p603_p9 = scmp.lt.u32.totalorder %s599_s25, %s712_s1 }
  0x15   :  { %p605_p10 = pnand %p603_p9, %p600_p8 }
  0x17   :  { %608 = shalt.err (!%p605_p10)
}
  0x18   :  { %s609_s30 = scalar_lea.vmem %s648_s12, 4224  ;;  %p614_p12 = scmp.lt.s32.totalorder %s648_s12, %s648_s12 }
  0x19   :  { %p610_p11 = scmp.ne.s32.totalorder %s648_s12, %s609_s30  ;;  %p615_p13 = scmp.lt.s32.totalorder %s609_s30, %s609_s30 }
  0x1b   :  { %p616_p0 = por %p615_p13, %p614_p12 }
  0x1d   :  { %p617_p1 = pnand %p616_p0, %p610_p11 }
  0x1f   :  { %620 = shalt.err (!%p617_p1)
}
  0x20   :  { %s627_s0 = smov 128   ;;  %s628_s3 = smov 8  }
  0x21   :  { %30 = dma.hbm_to_vmem [thread:$0]  %s712_s1, 4224, %s648_s12, [#allocation5], %s627_s0, %s627_s0, %s628_s3  }
  0x22   :  { %621 = dma.done.wait [#allocation3], 128  }
  0x23   :  { %622 = vsyncadd [#allocation3], 4294967168 }
  0x24   :  { %623 = dma.done.wait [#allocation5], 4224  }
  0x25   :  { %624 = vsyncadd [#allocation5], 4294963072  ;;  %v629_v0 = vmov 0.0|0.0   ;;  %vm630_vm0 = vmmov 0   ;;  %v631_v1 = vmov 0.0   ;;  %v38_v2 = vld [vmem:[#allocation4] sm:$0xff] }
  0x26   :  { %521 = vmatprep.subr.bf16.mxu0 %v629_v0  ;;  %461 = vmatprep.mubr.msk.f32.mxu0 %vm630_vm0, %v631_v1  ;;  %v39_v3 = vld [vmem:[#allocation4 + $0x8] sm:$0xff]  ;;  %v40_v4 = vld [vmem:[#allocation4 + $0x10] sm:$0xff]  ;;  %v41_v6 = vld [vmem:[#allocation4 + $0x18] sm:$0xff]  ;;  %vm71_vm1 = vcmask 261120   ;;  %vm146_vm2 = vcmask 523264   ;;  %s632_s1 = smov 64  }
  0x27   :  { %527 = vmatprep.subr.bf16.mxu1 %v629_v0  ;;  %480 = vmatprep.mubr.msk.f32.mxu1 %vm630_vm0, %v631_v1  ;;  %v522_v5 = vpack.c.bf16 %v39_v3, %v38_v2  ;;  %v43_v7 = vld [vmem:[#allocation4 + $0x28] sm:$0xff]  ;;  %v44_v8 = vld [vmem:[#allocation4 + $0x30] sm:$0xff]  ;;  %v45_v9 = vld [vmem:[#allocation4 + $0x38] sm:$0xff]  ;;  %v525_v11 = vpack.c.bf16 %v41_v6, %v40_v4 }
  0x28   :  { %v46_v10 = vld [vmem:[#allocation4 + $0x40] sm:$0xff]  ;;  %v528_v12 = vpack.c.bf16 %v44_v8, %v43_v7  ;;  %v47_v14 = vld [vmem:[#allocation4 + $0x48] sm:$0xff]  ;;  %v48_v15 = vld [vmem:[#allocation4 + $0x50] sm:$0xff] }
  0x29   :  { %523 = vmatpush3.bf16.msra.mxu0 %v522_v5  ;;  %v531_v13 = vpack.c.bf16 %v46_v10, %v45_v9  ;;  %v37_v16 = vld [vmem:[#allocation2] sm:$0xff]  ;;  %v534_v17 = vpack.c.bf16 %v48_v15, %v47_v14  ;;  %v50_v19 = vld [vmem:[#allocation4 + $0x60] sm:$0xff]  ;;  %v52_v21 = vld [vmem:[#allocation4 + $0x70] sm:$0xff] }
  0x2a   :  { %524 = vmatprep.subr.bf16.mxu0 %v629_v0  ;;  %529 = vmatpush3.bf16.msra.mxu1 %v528_v12  ;;  %v49_v18 = vld [vmem:[#allocation4 + $0x58] sm:$0xff]  ;;  %v54_v23 = vld [vmem:[#allocation4 + $0x80] sm:$0xff]  ;;  %v55_v25 = vld [vmem:[#allocation4 + $0x88] sm:$0xff] }
  0x2b   :  { %530 = vmatprep.subr.bf16.mxu1 %v629_v0  ;;  %v537_v20 = vpack.c.bf16 %v50_v19, %v49_v18  ;;  %v53_v22 = vld [vmem:[#allocation4 + $0x78] sm:$0xff]  ;;  %v543_v26 = vpack.c.bf16 %v55_v25, %v54_v23  ;;  %v56_v27 = vld [vmem:[#allocation4 + $0x90] sm:$0xff]  ;;  %v42_v30 = vld [vmem:[#allocation4 + $0x20] sm:$0xff] }
  0x2c   :  { %v540_v24 = vpack.c.bf16 %v53_v22, %v52_v21  ;;  %v57_v28 = vld [vmem:[#allocation4 + $0x98] sm:$0xff]  ;;  %v58_v35 = vld [vmem:[#allocation4 + $0xa0] sm:$0xff]  ;;  %v59_v36 = vld [vmem:[#allocation4 + $0xa8] sm:$0xff] }
  0x2d   :  { %526 = vmatpush3.bf16.msra.mxu0 %v525_v11  ;;  %v546_v29 = vpack.c.bf16 %v57_v28, %v56_v27  ;;  %v549_v37 = vpack.c.bf16 %v59_v36, %v58_v35  ;;  %v51_v38 = vld [vmem:[#allocation4 + $0x68] sm:$0xff]  ;;  %v62_v42 = vld [vmem:[#allocation4 + $0xc0] sm:$0xff]  ;;  %v64_v45 = vld [vmem:[#allocation4 + $0xd0] sm:$0xff] }
  0x2e   :  { %539 = vmatprep.subr.bf16.mxu0 %v629_v0  ;;  %532 = vmatpush3.bf16.msra.mxu1 %v531_v13  ;;  %v63_v43 = vld [vmem:[#allocation4 + $0xc8] sm:$0xff]  ;;  %v65_v46 = vld [vmem:[#allocation4 + $0xd8] sm:$0xff]  ;;  %v66_v48 = vld [vmem:[#allocation4 + $0xe0] sm:$0xff] }
  0x2f   :  { %533 = vmatprep.subr.bf16.mxu1 %v629_v0  ;;  %v552_v44 = vpack.c.bf16 %v63_v43, %v62_v42  ;;  %v555_v47 = vpack.c.bf16 %v65_v46, %v64_v45  ;;  %v67_v49 = vld [vmem:[#allocation4 + $0xe8] sm:$0xff]  ;;  %v68_v51 = vld [vmem:[#allocation4 + $0xf0] sm:$0xff]  ;;  %v69_v52 = vld [vmem:[#allocation4 + $0xf8] sm:$0xff] }
  0x30   :  { %462 = vmatmul.mubr.msk.f32.vlgmr.msra.gmra.mrb[0].mxu0 %vm71_vm1, %v37_v16  ;;  %v558_v50 = vpack.c.bf16 %v67_v49, %v66_v48  ;;  %v561_v53 = vpack.c.bf16 %v69_v52, %v68_v51  ;;  %v60_v12 = vld [vmem:[#allocation4 + $0xb0] sm:$0xff]  ;;  %v61_v14 = vld [vmem:[#allocation4 + $0xb8] sm:$0xff]  ;;  %v70_v18 = vld [vmem:[#allocation4 + $0x100] sm:$0xff] }
  0x31   :  { %499 = vmatprep.mubr.msk.f32.mxu0 %vm630_vm0, %v631_v1  ;;  %541 = vmatpush3.bf16.msra.mxu0 %v540_v24 }
  0x32   :  { %535 = vmatpush3.bf16.msra.mxu1 %v534_v17  ;;  %542 = vmatprep.subr.bf16.mxu0 %v629_v0 }
  0x33   :  { %536 = vmatprep.subr.bf16.mxu1 %v629_v0 }
  0x35   :  { %544 = vmatpush3.bf16.msra.mxu0 %v543_v26 }
  0x36   :  { %538 = vmatpush3.bf16.msra.mxu1 %v537_v20  ;;  %545 = vmatprep.subr.bf16.mxu0 %v629_v0 }
  0x37   :  { %551 = vmatprep.subr.bf16.mxu1 %v629_v0 }
  0x39   :  { %547 = vmatpush3.bf16.msra.mxu0 %v546_v29 }
  0x3a   :  { %548 = vmatprep.subr.bf16.mxu0 %v629_v0 }
  0x3d   :  { %550 = vmatpush3.bf16.msra.mxu0 %v549_v37 }
 0x103   :  { %v141_v31 = vpop.f32.mrb[0].mxu0 }
 0x104   :  { %v142_v32 = vadd.f32 %v141_v31, %v42_v30  ;;  %v463_v33 = vpop.f32.mrb[1].mxu0 }
 0x106   :  { %v145_v34 = vmax.f32 %v142_v32, 0.0 }
 0x108   :  { %481 = vmatmul.mubr.msk.f32.vlgmr.msra.gmra.mrb[0].mxu1 %vm146_vm2, %v145_v34 }
 0x109   :  { %518 = vmatprep.mubr.msk.f32.mxu1 %vm630_vm0, %v631_v1  ;;  %553 = vmatpush3.bf16.msra.mxu1 %v552_v44 }
 0x10a   :  { %554 = vmatprep.subr.bf16.mxu1 %v629_v0 }
 0x10d   :  { %556 = vmatpush3.bf16.msra.mxu1 %v555_v47 }
 0x10e   :  { %557 = vmatprep.subr.bf16.mxu1 %v629_v0 }
 0x111   :  { %559 = vmatpush3.bf16.msra.mxu1 %v558_v50 }
 0x112   :  { %560 = vmatprep.subr.bf16.mxu1 %v629_v0 }
 0x115   :  { %562 = vmatpush3.bf16.msra.mxu1 %v561_v53 }
 0x1db   :  { %v216_v39 = vpop.f32.mrb[0].mxu1 }
 0x1dc   :  { %v695_v40 = vadd.f32 %v216_v39, %v51_v38  ;;  %v482_v41 = vpop.f32.mrb[1].mxu1 }
 0x1de   :  { %500 = vmatmul.mubr.msk.f32.vlgmr.msra.gmra.mrb[2].mxu0 %vm146_vm2, %v695_v40 }
 0x2b1   :  { %v289_v54 = vpop.f32.mrb[2].mxu0 }
 0x2b2   :  { %v293_v55 = vsel %vm146_vm2, %v289_v54, 0.0  ;;  %v501_v56 = vpop.f32.mrb[3].mxu0 }
 0x2b3   :  { %v294_v57 = vrot.slane %v293_v55, 4 }
 0x2b5   :  { %v295_v58 = vadd.f32 %v294_v57, %v293_v55 }
 0x2b7   :  { %v296_v59 = vrot.slane %v295_v58, 2 }
 0x2b9   :  { %v297_v60 = vadd.f32 %v296_v59, %v295_v58 }
 0x2bb   :  { %v298_v61 = vrot.slane %v297_v60, 1 }
 0x2bd   :  { %v299_v62 = vadd.f32 %v298_v61, %v297_v60 }
 0x2bf   :  { %v301_v63 = vmul.f32 0.125, %v299_v62 }
 0x2c1   :  { %v302_v1 = vsub.f32 %v289_v54, %v301_v63 }
 0x2c3   :  { %v303_v2 = vmul.f32 %v302_v1, %v302_v1 }
 0x2c5   :  { %v304_v3 = vsel %vm146_vm2, %v303_v2, 0.0 }
 0x2c6   :  { %v305_v0 = vrot.slane %v304_v3, 4 }
 0x2c8   :  { %v306_v4 = vadd.f32 %v305_v0, %v304_v3 }
 0x2ca   :  { %v307_v5 = vrot.slane %v306_v4, 2 }
 0x2cc   :  { %v308_v6 = vadd.f32 %v307_v5, %v306_v4 }
 0x2ce   :  { %v309_v7 = vrot.slane %v308_v6, 1 }
 0x2d0   :  { %v310_v8 = vadd.f32 %v309_v7, %v308_v6 }
 0x2d2   :  { %v311_v9 = vmul.f32 0.125, %v310_v8 }
 0x2d4   :  { %v312_v10 = vadd.f32 1e-05, %v311_v9 }
 0x2d6   :  { %571 = vrsqrt.f32 %v312_v10 }
 0x2e0   :  { %v572_v11 = vpop.eup %571 }
 0x2e1   :  { %v314_v13 = vmul.f32 %v572_v11, %v302_v1 }
 0x2e3   :  { %v315_v15 = vmul.f32 %v314_v13, %v60_v12 }
 0x2e5   :  { %v316_v16 = vadd.f32 %v315_v15, %v61_v14 }
 0x2e7   :  { %v317_v17 = vmax.f32 %v316_v16, 0.0 }
 0x2e9   :  { %519 = vmatmul.mubr.msk.f32.vlgmr.msra.gmra.mrb[2].mxu1 %vm146_vm2, %v317_v17 }
 0x3bc   :  { %v387_v19 = vpop.f32.mrb[2].mxu1 }
 0x3bd   :  { %v388_v20 = vadd.f32 %v387_v19, %v70_v18  ;;  %v520_v21 = vpop.f32.mrb[3].mxu1 }
 0x3bf   :  { %v391_v22 = vmul.f32 %v388_v20, %v388_v20 }
 0x3c1   :  { %v392_v23 = vsel %vm146_vm2, %v391_v22, 0.0 }
 0x3c2   :  { %393 = vadd.xlane.f32.xlu0 %v392_v23 }
 0x44f   :  { %v394_v24 = vpop.xlane.xlu0 %393 }
 0x450   :  { %573 = vrsqrt.f32 %v394_v24  ;;  %vm397_vm3 = vcmp.eq.f32.partialorder %v394_v24, inf  ;;  %v400_v27 = vand.u32 2147483648, %v394_v24  ;;  %vm399_vm4 = vcmp.eq.f32.partialorder %v394_v24, 0.0 }
 0x45a   :  { %v574_v25 = vpop.eup %573 }
 0x45b   :  { %v396_v26 = vmul.f32 %v574_v25, %v394_v24 }
 0x45d   :  { %v398_v28 = vsel %vm397_vm3, %v394_v24, %v396_v26 }
 0x45e   :  { %v401_v29 = vsel %vm399_vm4, %v400_v27, %v398_v28 }
 0x45f   :  { %v402_v30 = vmax.f32 %v401_v29, 1e-12 }
 0x461   :  { %575 = vrcp.f32 %v402_v30 }
 0x46b   :  { %v576_v31 = vpop.eup %575 }
 0x46c   :  { %v404_v32 = vmul.f32 %v576_v31, %v388_v20 }
 0x46e   :  { %406 = vrot.lane.b32.xlu0 %v404_v32, %s632_s1 }
 0x4e0   :  { %v407_v33 = vpop.permute.xlu0 %406 }
 0x4e1   :  { %v409_v34 = vsel %vm146_vm2, %v695_v40, %v407_v33 }
 0x4e2   :  { %410 = vst [vmem:[%s713_s2] sm:$0xff] %v409_v34 }
 0x4e3   :  { %415 = vsyncpa [#allocation3], 1 }
 0x4e4   :  { %416 = vsyncpa [#allocation5], 1 }

</bundles_post_ra>
